<compile_context>
chip_gen: v5e
topology: v5e:2x2
jax: 0.10.0
libtpu: 0.0.40
codegen_flags: <defaults>
</compile_context>

<pallas_src>
import jax
import jax.numpy as jnp
from jax import lax
from jax.experimental import pallas as pl
from jax.experimental.pallas import tpu as pltpu

EPS = 1e-5


# ----------------------------- Pallas kernel -----------------------------

def _make_kernel(h, w, cin, cout, ksize):
    """Build a ConvBnSiLu kernel for static (H, W, Cin, Cout, k)."""
    assert ksize % 2 == 1, "only odd kernel sizes (stride-1 'same' padding) supported"
    hw = h * w
    r = ksize // 2  # "same" padding radius (stride 1, odd k)

    def kernel(x_ref, w_ref, o_ref):
        # x_ref: (1, Cin, H*W)  w_ref: (Cout, k*k*Cin + 1)  o_ref: (1, Cout, H*W)
        x = x_ref[0]                                           # (Cin, HW), f32

        # ---- hoisted border masks (computed once, AND-ed per tap) ----
        pos = lax.broadcasted_iota(jnp.int32, (1, hw), 1)      # p = y*W + x
        col = pos % w
        row_mask = {}
        col_mask = {}
        for d in range(-r, r + 1):
            if d < 0:
                row_mask[d] = pos >= (-d) * w
                col_mask[d] = col >= (-d)
            elif d > 0:
                row_mask[d] = pos < (h - d) * w
                col_mask[d] = col <= (w - 1 - d)
            else:
                row_mask[d] = None
                col_mask[d] = None

        # ---- im2col: build the (k*k*Cin + 1, HW) tap matrix ----
        taps = []
        for dy in range(-r, r + 1):
            for dx in range(-r, r + 1):
                off = dy * w + dx
                # t[:, p] = x[:, p + off] (cyclic); wrap-around killed by masks.
                t = x if off == 0 else pltpu.roll(x, (-off) % hw, axis=1)
                m = row_mask[dy]
                if col_mask[dx] is not None:
                    m = col_mask[dx] if m is None else jnp.logical_and(m, col_mask[dx])
                if m is not None:
                    t = jnp.where(m, t, 0.0)
                taps.append(t)                                  # (Cin, HW)
        taps.append(jnp.ones((1, hw), jnp.float32))             # bias row
        tap_mat = jnp.concatenate(taps, axis=0)                 # (k*k*Cin + 1, HW)

        # ---- single MXU matmul: bf16 operands, f32 accumulate ----
        acc = jnp.dot(w_ref[...].astype(jnp.bfloat16),
                      tap_mat.astype(jnp.bfloat16),
                      preferred_element_type=jnp.float32)        # (Cout, HW)

        # SiLU (f32, EUP sigmoid).
        o_ref[0] = (acc * jax.nn.sigmoid(acc)).astype(o_ref.dtype)

    return kernel


# ------------------------------- wrapper ---------------------------------

def conv_bn_silu(x_nchw, wpk, kernel_size):
    n, cin, h, w = x_nchw.shape
    cout = wpk.shape[0]
    hw = h * w

    # Free reshape (no transpose, no pad): NCHW -> (N, C, H*W), lane-dense last dim.
    x_flat = x_nchw.reshape(n, cin, hw).astype(jnp.float32)

    out = pl.pallas_call(
        _make_kernel(h, w, cin, cout, kernel_size),
        out_shape=jax.ShapeDtypeStruct((n, cout, hw), jnp.float32),
        grid_spec=pltpu.PrefetchScalarGridSpec(
            num_scalar_prefetch=0,
            grid=(n,),
            in_specs=[
                pl.BlockSpec((1, cin, hw), lambda i: (i, 0, 0)),
                pl.BlockSpec((cout, kernel_size * kernel_size * cin + 1),
                             lambda i: (0, 0)),
            ],
            out_specs=pl.BlockSpec((1, cout, hw), lambda i: (i, 0, 0)),
        ),
        compiler_params=pltpu.CompilerParams(dimension_semantics=("parallel",)),
    )(x_flat, wpk)

    return out.reshape(n, cout, h, w)


# --------------------- parameter folding (eval-mode BN) -------------------

def pack_params(raw, kernel_size):
    """Fold BatchNorm (eval mode) + conv bias into one (Cout, k*k*Cin+1) array."""
    scale = raw["g"] / jnp.sqrt(raw["v"] + EPS)          # (Cout,)
    shift = raw["b"] - raw["m"] * scale                  # (Cout,)
    w_f = raw["conv_w"] * scale[:, None, None, None]     # (Cout, Cin, k, k)
    b_f = raw["conv_b"] * scale + shift                  # (Cout,)

    cout, cin, kh, kw = w_f.shape
    assert kh == kernel_size and kw == kernel_size
    # Column order: ((dy+r)*k + (dx+r)) * Cin + ci  -- matches the kernel's tap order.
    wmat = jnp.transpose(w_f, (0, 2, 3, 1)).reshape(cout, kh * kw * cin)
    return jnp.concatenate([wmat, b_f[:, None]], axis=1).astype(jnp.float32)


# ----------------------- plain-JAX reference check ------------------------

def ref_forward(x, raw, pad):
    y = lax.conv_general_dilated(
        x, raw["conv_w"], (1, 1), ((pad, pad), (pad, pad)),
        dimension_numbers=("NCHW", "OIHW", "NCHW"))
    y = y + raw["conv_b"][None, :, None, None]
    scale = raw["g"] / jnp.sqrt(raw["v"] + EPS)
    shift = raw["b"] - raw["m"] * scale
    y = y * scale[None, :, None, None] + shift[None, :, None, None]
    return y * jax.nn.sigmoid(y)


# --------------------------------- main -----------------------------------

if __name__ == "__main__":
    key = jax.random.PRNGKey(0)
    kx, kw_, kb, kg, kbe, km, kv = jax.random.split(key, 7)

    N, CIN, COUT, H, W, K = 2, 4, 8, 16, 16, 3
    x = jax.random.normal(kx, (N, CIN, H, W), jnp.float32)

    raw = dict(
        conv_w=0.1 * jax.random.normal(kw_, (COUT, CIN, K, K), jnp.float32),
        conv_b=0.1 * jax.random.normal(kb, (COUT,), jnp.float32),
        g=1.0 + 0.1 * jax.random.normal(kg, (COUT,), jnp.float32),
        b=0.1 * jax.random.normal(kbe, (COUT,), jnp.float32),
        m=0.1 * jax.random.normal(km, (COUT,), jnp.float32),
        v=1.0 + jnp.abs(0.1 * jax.random.normal(kv, (COUT,), jnp.float32)),
    )
    wpk = pack_params(raw, K)

    out = conv_bn_silu(x, wpk, kernel_size=K)
    out = jax.block_until_ready(out)

    ref = ref_forward(x, raw, pad=K // 2)
    assert out.shape == ref.shape, (out.shape, ref.shape)
    max_err = float(jnp.max(jnp.abs(out - ref)))
    # bf16 MXU operands with f32 accumulate: typical |err| ~1e-3 at these magnitudes.
    assert max_err < 3e-2, f"mismatch vs f32 reference: {max_err}"

    print("KERNEL_OK")
</pallas_src>

<mosaic_0001>
module attributes {stable_mosaic.version = 11 : i64} {
  func.func @kernel(%arg0: i32, %arg1: memref<1x4x256xf32, #tpu.memory_space<vmem>>, %arg2: memref<8x37xf32, #tpu.memory_space<vmem>>, %arg3: memref<1x8x256xf32, #tpu.memory_space<vmem>>) attributes {dimension_semantics = [#tpu.dimension_semantics<parallel>], iteration_bounds = array<i64: 2>, scalar_prefetch = 0 : i64, scratch_operands = 0 : i64, tpu.core_type = #tpu.core_type<tc>, window_params = [{transform_indices = @transform_0, window_bounds = array<i64: 1, 4, 256>}, {pipeline_mode = #tpu.pipeline_mode<synchronous>, transform_indices = @transform_1, window_bounds = array<i64: 8, 37>}, {transform_indices = @transform_2, window_bounds = array<i64: 1, 8, 256>}]} {
    %c0 = arith.constant 0 : index
    %c0_0 = arith.constant 0 : index
    %c0_1 = arith.constant 0 : index
    %0 = vector.load %arg1[%c0, %c0_0, %c0_1] : memref<1x4x256xf32, #tpu.memory_space<vmem>>, vector<1x4x256xf32>
    %1 = vector.shape_cast %0 : vector<1x4x256xf32> to vector<4x256xf32>
    %2 = tpu.iota {dimensions = array<i32: 1>} : vector<1x256xi32>
    %c16_i32 = arith.constant 16 : i32
    %c0_i32 = arith.constant 0 : i32
    %3 = arith.cmpi eq, %c16_i32, %c0_i32 : i32
    %c1_i32 = arith.constant 1 : i32
    %4 = arith.select %3, %c1_i32, %c16_i32 : i32
    %5 = vector.broadcast %4 : i32 to vector<1x256xi32>
    %6 = arith.remsi %2, %5 : vector<1x256xi32>
    %c0_i32_2 = arith.constant 0 : i32
    %7 = vector.broadcast %c0_i32_2 : i32 to vector<1x256xi32>
    %8 = arith.cmpi ne, %6, %7 : vector<1x256xi32>
    %c0_i32_3 = arith.constant 0 : i32
    %9 = vector.broadcast %c0_i32_3 : i32 to vector<1x256xi32>
    %10 = arith.cmpi slt, %6, %9 : vector<1x256xi32>
    %c0_i32_4 = arith.constant 0 : i32
    %11 = arith.cmpi slt, %4, %c0_i32_4 : i32
    %12 = vector.broadcast %11 : i1 to vector<1x256xi1>
    %13 = vector.broadcast %12 : vector<1x256xi1> to vector<1x256xi1>
    %14 = arith.xori %10, %13 : vector<1x256xi1>
    %15 = arith.andi %14, %8 : vector<1x256xi1>
    %16 = vector.broadcast %4 : i32 to vector<1x256xi32>
    %17 = arith.addi %6, %16 : vector<1x256xi32>
    %18 = arith.select %15, %17, %6 : vector<1x256xi1>, vector<1x256xi32>
    %c16_i32_5 = arith.constant 16 : i32
    %19 = vector.broadcast %c16_i32_5 : i32 to vector<1x256xi32>
    %20 = arith.cmpi sge, %2, %19 : vector<1x256xi32>
    %c1_i32_6 = arith.constant 1 : i32
    %21 = vector.broadcast %c1_i32_6 : i32 to vector<1x256xi32>
    %22 = arith.cmpi sge, %18, %21 : vector<1x256xi32>
    %c240_i32 = arith.constant 240 : i32
    %23 = vector.broadcast %c240_i32 : i32 to vector<1x256xi32>
    %24 = arith.cmpi slt, %2, %23 : vector<1x256xi32>
    %c14_i32 = arith.constant 14 : i32
    %25 = vector.broadcast %c14_i32 : i32 to vector<1x256xi32>
    %26 = arith.cmpi sle, %18, %25 : vector<1x256xi32>
    %c17_i32 = arith.constant 17 : i32
    %27 = tpu.dynamic_rotate %1 by %c17_i32 dim 1 : vector<4x256xf32>, i32 -> vector<4x256xf32>
    %28 = arith.andi %20, %22 : vector<1x256xi1>
    %cst = arith.constant 0.000000e+00 : f32
    %29 = vector.shape_cast %28 : vector<1x256xi1> to vector<1x256xi1>
    %30 = vector.broadcast %29 : vector<1x256xi1> to vector<4x256xi1>
    %31 = vector.broadcast %cst : f32 to vector<4x256xf32>
    %32 = arith.select %30, %27, %31 : vector<4x256xi1>, vector<4x256xf32>
    %c16_i32_7 = arith.constant 16 : i32
    %33 = tpu.dynamic_rotate %1 by %c16_i32_7 dim 1 : vector<4x256xf32>, i32 -> vector<4x256xf32>
    %cst_8 = arith.constant 0.000000e+00 : f32
    %34 = vector.shape_cast %20 : vector<1x256xi1> to vector<1x256xi1>
    %35 = vector.broadcast %34 : vector<1x256xi1> to vector<4x256xi1>
    %36 = vector.broadcast %cst_8 : f32 to vector<4x256xf32>
    %37 = arith.select %35, %33, %36 : vector<4x256xi1>, vector<4x256xf32>
    %c15_i32 = arith.constant 15 : i32
    %38 = tpu.dynamic_rotate %1 by %c15_i32 dim 1 : vector<4x256xf32>, i32 -> vector<4x256xf32>
    %39 = arith.andi %20, %26 : vector<1x256xi1>
    %cst_9 = arith.constant 0.000000e+00 : f32
    %40 = vector.shape_cast %39 : vector<1x256xi1> to vector<1x256xi1>
    %41 = vector.broadcast %40 : vector<1x256xi1> to vector<4x256xi1>
    %42 = vector.broadcast %cst_9 : f32 to vector<4x256xf32>
    %43 = arith.select %41, %38, %42 : vector<4x256xi1>, vector<4x256xf32>
    %c1_i32_10 = arith.constant 1 : i32
    %44 = tpu.dynamic_rotate %1 by %c1_i32_10 dim 1 : vector<4x256xf32>, i32 -> vector<4x256xf32>
    %cst_11 = arith.constant 0.000000e+00 : f32
    %45 = vector.shape_cast %22 : vector<1x256xi1> to vector<1x256xi1>
    %46 = vector.broadcast %45 : vector<1x256xi1> to vector<4x256xi1>
    %47 = vector.broadcast %cst_11 : f32 to vector<4x256xf32>
    %48 = arith.select %46, %44, %47 : vector<4x256xi1>, vector<4x256xf32>
    %c255_i32 = arith.constant 255 : i32
    %49 = tpu.dynamic_rotate %1 by %c255_i32 dim 1 : vector<4x256xf32>, i32 -> vector<4x256xf32>
    %cst_12 = arith.constant 0.000000e+00 : f32
    %50 = vector.shape_cast %26 : vector<1x256xi1> to vector<1x256xi1>
    %51 = vector.broadcast %50 : vector<1x256xi1> to vector<4x256xi1>
    %52 = vector.broadcast %cst_12 : f32 to vector<4x256xf32>
    %53 = arith.select %51, %49, %52 : vector<4x256xi1>, vector<4x256xf32>
    %c241_i32 = arith.constant 241 : i32
    %54 = tpu.dynamic_rotate %1 by %c241_i32 dim 1 : vector<4x256xf32>, i32 -> vector<4x256xf32>
    %55 = arith.andi %24, %22 : vector<1x256xi1>
    %cst_13 = arith.constant 0.000000e+00 : f32
    %56 = vector.shape_cast %55 : vector<1x256xi1> to vector<1x256xi1>
    %57 = vector.broadcast %56 : vector<1x256xi1> to vector<4x256xi1>
    %58 = vector.broadcast %cst_13 : f32 to vector<4x256xf32>
    %59 = arith.select %57, %54, %58 : vector<4x256xi1>, vector<4x256xf32>
    %c240_i32_14 = arith.constant 240 : i32
    %60 = tpu.dynamic_rotate %1 by %c240_i32_14 dim 1 : vector<4x256xf32>, i32 -> vector<4x256xf32>
    %cst_15 = arith.constant 0.000000e+00 : f32
    %61 = vector.shape_cast %24 : vector<1x256xi1> to vector<1x256xi1>
    %62 = vector.broadcast %61 : vector<1x256xi1> to vector<4x256xi1>
    %63 = vector.broadcast %cst_15 : f32 to vector<4x256xf32>
    %64 = arith.select %62, %60, %63 : vector<4x256xi1>, vector<4x256xf32>
    %c239_i32 = arith.constant 239 : i32
    %65 = tpu.dynamic_rotate %1 by %c239_i32 dim 1 : vector<4x256xf32>, i32 -> vector<4x256xf32>
    %66 = arith.andi %24, %26 : vector<1x256xi1>
    %cst_16 = arith.constant 0.000000e+00 : f32
    %67 = vector.shape_cast %66 : vector<1x256xi1> to vector<1x256xi1>
    %68 = vector.broadcast %67 : vector<1x256xi1> to vector<4x256xi1>
    %69 = vector.broadcast %cst_16 : f32 to vector<4x256xf32>
    %70 = arith.select %68, %65, %69 : vector<4x256xi1>, vector<4x256xf32>
    %cst_17 = arith.constant 1.000000e+00 : f32
    %71 = vector.broadcast %cst_17 : f32 to vector<1x256xf32>
    %72 = tpu.concatenate %32, %37, %43, %48, %1, %53, %59, %64, %70, %71 in 0 : vector<4x256xf32>, vector<4x256xf32>, vector<4x256xf32>, vector<4x256xf32>, vector<4x256xf32>, vector<4x256xf32>, vector<4x256xf32>, vector<4x256xf32>, vector<4x256xf32>, vector<1x256xf32> -> vector<37x256xf32>
    %c0_18 = arith.constant 0 : index
    %c0_19 = arith.constant 0 : index
    %73 = vector.load %arg2[%c0_18, %c0_19] : memref<8x37xf32, #tpu.memory_space<vmem>>, vector<8x37xf32>
    %74 = arith.truncf %73 : vector<8x37xf32> to vector<8x37xbf16>
    %75 = arith.truncf %72 : vector<37x256xf32> to vector<37x256xbf16>
    %cst_20 = arith.constant dense<0.000000e+00> : vector<8x256xf32>
    %76 = tpu.matmul %74, %75, %cst_20 {dimension_numbers = #tpu.dot_dimension_numbers<[1], [0], [0], [1], [0, 0, 1, 1], [], []>} : vector<8x37xbf16>, vector<37x256xbf16>, vector<8x256xf32> -> vector<8x256xf32>
    %77 = arith.negf %76 : vector<8x256xf32>
    %78 = math.exp %77 : vector<8x256xf32>
    %cst_21 = arith.constant 1.000000e+00 : f32
    %79 = vector.broadcast %cst_21 : f32 to vector<8x256xf32>
    %80 = arith.addf %79, %78 : vector<8x256xf32>
    %81 = arith.divf %79, %80 : vector<8x256xf32>
    %82 = arith.mulf %76, %81 : vector<8x256xf32>
    %c0_22 = arith.constant 0 : index
    %c0_23 = arith.constant 0 : index
    %c0_24 = arith.constant 0 : index
    %83 = vector.load %arg3[%c0_22, %c0_23, %c0_24] : memref<1x8x256xf32, #tpu.memory_space<vmem>>, vector<1x8x256xf32>
    %84 = vector.shape_cast %83 : vector<1x8x256xf32> to vector<8x256xf32>
    %85 = vector.shape_cast %82 : vector<8x256xf32> to vector<1x8x256xf32>
    tpu.vector_store %arg3[%c0_22, %c0_23, %c0_24], %85 {strides = array<i32>} : memref<1x8x256xf32, #tpu.memory_space<vmem>>, vector<1x8x256xf32>,
    return
  }
  func.func @transform_0(%arg0: i32) -> (i32, i32, i32) {
    %c0_i32 = arith.constant 0 : i32
    %c0_i32_0 = arith.constant 0 : i32
    %c0_i32_1 = arith.constant 0 : i32
    return %arg0, %c0_i32, %c0_i32_0 : i32, i32, i32
  }
  func.func @transform_1(%arg0: i32) -> (i32, i32) {
    %c0_i32 = arith.constant 0 : i32
    %c0_i32_0 = arith.constant 0 : i32
    %c0_i32_1 = arith.constant 0 : i32
    return %c0_i32, %c0_i32_0 : i32, i32
  }
  func.func @transform_2(%arg0: i32) -> (i32, i32, i32) {
    %c0_i32 = arith.constant 0 : i32
    %c0_i32_0 = arith.constant 0 : i32
    %c0_i32_1 = arith.constant 0 : i32
    return %arg0, %c0_i32, %c0_i32_0 : i32, i32, i32
  }
}

</mosaic_0001>

<bundles_post_ra>
// kernel: tpu_custom_call.1
= control target key start
LH: loop header
LB: loop body
LE: loop exit
PB: predicated region body
PF: predicated region fallthrough
CT: control target
= control target key end

     0   :  { %7 = vsyncpa [#allocation3], 0  ;;  %s1147_s0 = inlined_call_operand.hbm [shape: f32[2,4,256], index: 0, kind: input, shape index: {}]   ;;  %s1148_s1 = inlined_call_operand.hbm [shape: f32[8,37], index: 1, kind: input, shape index: {}]   ;;  %s1149_s2 = inlined_call_operand.hbm [shape: f32[2,8,256], index: 2, kind: output, shape index: {}]  }
   0x1   :  { %9 = vsyncpa [#allocation3 + $0x1], 0 }
   0x2   :  { %10 = vsyncpa [#allocation6], 0 }
   0x3   :  { %11 = vsyncpa [#allocation4], 0 }
   0x4   :  { %13 = vsyncpa [#allocation4 + $0x1], 0  ;;  %s887_s9 = smov 0   ;;  %s889_s10 = smov 0  }
   0x5   :  { %s891_s11 = smov 0   ;;  %s893_s12 = smov 0  }
   0x6 LB: > { %s908_s13 = sadd.s32 4294967295, %s860_s12   ;;  %s594_s14 = sadd.s32 4294967294, %s860_s12   ;;  %s860_s12 = sphi %s893_s12, %s1173_s12   ;;  %s856_s11 = sphi %s891_s11, %s1172_s11   ;;  %s852_s10 = sphi %s889_s10, %s1171_s10   ;;  %s848_s9 = sphi %s887_s9, %s1170_s9  }
   0x7   : > { %p39_p0 = scmp.ne.s32.totalorder %s852_s10, %s848_s9  ;;  %p40_p1 = scmp.eq.s32.totalorder %s908_s13, 0 }
   0x8   : > { %p84_p2 = scmp.eq.s32.totalorder %s908_s13, 1  ;;  %p90_p3 = scmp.eq.s32.totalorder %s594_s14, 1 }
   0x9   : > { %p917_p4 = por %p40_p1, %p39_p0  ;;  %p595_p5 = scmp.ge.s32.totalorder %s860_s12, 1 }
   0xa   : > { %p922_p6 = por %p90_p3, %p39_p0  ;;  %p97_p7 = scmp.lt.s32.totalorder %s860_s12, 3 }
   0xb   : > { %s109_s19 = sshll.u32 %s1148_s1, 4  ;;  %s862_s21 = smov [#allocation5]   ;;  %s110_s19 = int_to_ptr.hbm [resolvable:$true] %s109_s19 }
   0xc   : > { %p930_p8 = pnand %p595_p5, %p97_p7  ;;  %s111_s22 = sshll.u32 %s862_s21, 4  ;;  %s112_s22 = int_to_ptr.vmem [resolvable:$true] %s111_s22 }
   0xd   : > { %s940_s23 = sadd.s32 1, %s860_s12   ;;  %s26_s24 = sadd.s32 1, %s856_s11 }
   0xe   : > { %p624_p10 = pneg %p930_p8  ;;  %s23_s25 = ssub.s32 %s860_s12, %s940_s23 }
   0xf   : > { %p24_p12 = scmp.eq.s32.totalorder %s23_s25, 0  ;;  %p33_p13 = scmp.ne.s32.totalorder %s856_s11, %s852_s10 }
  0x10   : > { %p625_p11 = pnand %p624_p10, %p40_p1  ;;  %p34_p0 = scmp.eq.s32.totalorder %s860_s12, 0 }
  0x11   : > { %s949_s26 = scalar_select %p24_p12, %s856_s11, %s26_s24  }
  0x12   : > { %627 = dma.hbm_to_vmem [thread:$0]  (!%p625_p11), %s110_s19, 128, %s112_s22, [#allocation6]  }
  0x13   : > { %p953_p3 = por %p84_p2, %p33_p13  ;;  %p637_p5 = scmp.lt.s32.totalorder %s860_s12, 2 }
  0x14   : > { %s122_s28 = sand.u32 1, %s856_s11   ;;  %s614_s29 = sshll.u32 %s860_s12, 3 }
  0x15   : > { %p35_p7 = por %p34_p0, %p33_p13  ;;  %s598_s30 = sshll.u32 %s122_s28, 3 }
  0x16   : > { %s131_s5 = scalar_lea.hbm %s1147_s0, %s614_s29  ;;  %s126_s7 = scalar_lea.vmem [#allocation2], %s598_s30 }
  0x17   : > { %s133_s6 = sshll.u32 %s131_s5, 4  ;;  %s135_s8 = sshll.u32 %s126_s7, 4  ;;  %s134_s6 = int_to_ptr.hbm [resolvable:$true] %s133_s6  ;;  %s136_s8 = int_to_ptr.vmem [resolvable:$true] %s135_s8 }
  0x18   : > { %p963_p10 = pnand %p637_p5, %p35_p7  ;;  %s123_s17 = scalar_lea.sflag [#allocation3], %s122_s28 }
  0x19   : > { %s760_s18 = sshra.s32 %s134_s6, 4  ;;  %s767_s24 = scalar_lea.hbm %s1147_s0, 16  ;;  %s761_s18 = int_to_ptr.hbm [resolvable:$true] %s760_s18 }
  0x1a   : > { %s762_s19 = scalar_lea.hbm %s761_s18, 8  ;;  %p764_p11 = pneg %p963_p10 }
  0x1b   : > { %p763_p2 = scmp.ne.s32.totalorder %s761_s18, %s762_s19  ;;  %p768_p0 = scmp.lt.s32.totalorder %s761_s18, %s1147_s0 }
  0x1c   : > { %p769_p5 = scmp.lt.s32.totalorder %s767_s24, %s762_s19 }
  0x1d   : > { %p765_p12 = pnand %p764_p11, %p763_p2 }
  0x1e   : > { %p770_p7 = por %p769_p5, %p768_p0 }
  0x1f   : > { %p766_p13 = pneg %p765_p12 }
  0x21   : > { %p771_p9 = pnand %p770_p7, %p766_p13 }
  0x23   : > { %774 = shalt.err (!%p771_p9)
}
  0x24   : > { %631 = dma.hbm_to_vmem [thread:$0]  (!%p963_p10), %s134_s6, 128, %s136_s8, %s123_s17  }
  0x25   : > { %144 = sbr.rel (%p930_p8) target bundleno = 413 (0x19d), region = 28  ;;  %s980_s28 = sand.u32 (!%p930_p8), 1, %s852_s10  }
  0x26   : > { %s602_s30 = sshll.u32 (!%p930_p8), %s980_s28, 3  ;;  %s147_s3 = scalar_lea.sflag (!%p930_p8), [#allocation3], %s980_s28 }
  0x27   : > { %s150_s4 = scalar_lea.vmem (!%p930_p8), [#allocation2], %s602_s30 }
  0x2a   : > { %835 = dma.done.wait (%p917_p4), %s147_s3, 128  }
  0x2b   : > { %837 = vsyncadd (%p917_p4), %s147_s3, 4294967168 }
  0x2c   : > { %839 = dma.done.wait (%p40_p1), [#allocation6], 128  }
  0x2d   : > { %841 = vsyncadd (%p40_p1), [#allocation6], 4294967168  ;;  %v178_v0 = vld [vmem:[%s150_s4] sm:$0xff]  ;;  %s863_s15 = smov 16   ;;  %s864_s20 = smov 112   ;;  %v179_v25 = vlaneseq  ;;  %vm419_vm4 = vcmask 1041408  }
  0x2e   : > { %215 = vst [vmem:[#allocation1] ss:$2 sm:$0xff] %v178_v0  ;;  %s865_s5 = smov 1   ;;  %s866_s6 = smov 111   ;;  %vm396_vm9 = vcmask 1043456   ;;  %vm420_vm11 = vcmask 1042432  }
  0x2f   : > { %s867_s7 = smov 113   ;;  %s868_s8 = smov 127   ;;  %v992_v26 = vand.u32 127, %v179_v25  ;;  %v871_v45 = vmov 65535  }
  0x30   : > { %s869_s14 = smov 15   ;;  %s870_s17 = smov 17   ;;  %v421_v46 = vsel %vm419_vm4, 4294967295, %v871_v45 }
  0x31   : > { %v181_v28 = vadd.s32 128, %v992_v26  ;;  %v186_v31 = vand.u32 15, %v992_v26  ;;  %vm338_vm0 = vcmp.lt.s32.totalorder %v992_v26, 112  ;;  %vm244_vm1 = vcmp.lt.s32.totalorder %v992_v26, 16  ;;  %s604_s18 = sshll.u32 %s980_s28, 4  ;;  %s615_s19 = sshll.u32 %s908_s13, 4 }
  0x32   : > { %vm300_vm5 = vcmp.lt.s32.totalorder %v992_v26, 127  ;;  %vm356_vm7 = vcmp.lt.s32.totalorder %v992_v26, 111  ;;  %vm318_vm8 = vcmp.lt.s32.totalorder %v992_v26, 113  ;;  %vm282_vm12 = vcmp.lt.s32.totalorder %v992_v26, 1  ;;  %s509_s24 = scalar_lea.hbm %s1149_s2, %s615_s19  ;;  %s176_s13 = scalar_lea.vmem [#allocation7], %s604_s18 }
  0x33   : > { %v193_v30 = vand.u32 15, %v181_v28  ;;  %vm211_vm2 = vcmp.lt.s32.totalorder %v181_v28, 240  ;;  %vm1007_vm6 = vcmp.le.s32.totalorder %v186_v31, 14  ;;  %v422_v57 = vsel %vm420_vm11, %v421_v46, 0  ;;  %s511_s25 = sshll.u32 %s176_s13, 4  ;;  %s513_s29 = sshll.u32 %s509_s24, 4  ;;  %s512_s25 = int_to_ptr.vmem [resolvable:$true] %s511_s25  ;;  %s514_s29 = int_to_ptr.hbm [resolvable:$true] %s513_s29 }
  0x34   : > { %vm1033_vm13 = vcmp.ge.s32.totalorder %v186_v31, 1  ;;  %vm206_vm15 = vcmp.ge.s32.totalorder %v992_v26, 16  ;;  %vm262_vm4 = vcmp.lt.s32.totalorder %v992_v26, 15  ;;  %s498_s30 = scalar_lea.sflag [#allocation4], %s980_s28  ;;  %s804_s3 = sshra.s32 %s514_s29, 4  ;;  %s805_s3 = int_to_ptr.hbm [resolvable:$true] %s804_s3 }
  0x35   : > { %v216_v1 = vld.sshfl [vmem:[#allocation1] sm:$0xff pattern:$0x75316420]  ;;  %v217_v2 = vld.sshfl [vmem:[#allocation1 + $0x8] sm:$0xff pattern:$0x75316420]  ;;  %p811_p9 = scmp.lt.s32.totalorder %s805_s3, %s1149_s2 }
  0x36   : > { %235 = vst [vmem:[#allocation1] ss:$2 sm:$0xff] %v178_v0  ;;  %v712_v11 = vpack.i.bf16 %v217_v2, %v216_v1  ;;  %vm1002_vm3 = vcmp.le.s32.totalorder %v193_v30, 14  ;;  %vm1037_vm14 = vcmp.ge.s32.totalorder %v193_v30, 1  ;;  %s806_s4 = scalar_lea.hbm %s805_s3, 16 }
  0x37   : > { %vm1020_vm10 = vmand %vm211_vm2, %vm1002_vm3  ;;  %p807_p1 = scmp.ne.s32.totalorder %s805_s3, %s806_s4 }
  0x39   : > { %p808_p4 = pnand %p807_p1, %p953_p3 }
  0x3b   : > { %p809_p8 = pneg %p808_p4 }
  0x3d   : > { %v236_v3 = vld.sshfl [vmem:[#allocation1] sm:$0xff pattern:$0x75316420]  ;;  %v237_v4 = vld.sshfl [vmem:[#allocation1 + $0x8] sm:$0xff pattern:$0x75316420] }
  0x3e   : > { %253 = vst [vmem:[#allocation1] ss:$2 sm:$0xff] %v178_v0  ;;  %v702_v14 = vpack.i.bf16 %v237_v4, %v236_v3 }
  0x40   : > { %703 = vrot.lane.b32.xlu2 %v702_v14, %s863_s15 }
  0x45   : > { %v254_v5 = vld.sshfl [vmem:[#allocation1] sm:$0xff pattern:$0x75316420]  ;;  %v255_v6 = vld.sshfl [vmem:[#allocation1 + $0x8] sm:$0xff pattern:$0x75316420] }
  0x46   : > { %273 = vst [vmem:[#allocation1] ss:$2 sm:$0xff] %v178_v0  ;;  %v717_v24 = vpack.i.bf16 %v255_v6, %v254_v5 }
  0x4d   : > { %v274_v7 = vld.sshfl [vmem:[#allocation1] sm:$0xff pattern:$0x75316420]  ;;  %v275_v8 = vld.sshfl [vmem:[#allocation1 + $0x8] sm:$0xff pattern:$0x75316420] }
  0x4e   : > { %291 = vst [vmem:[#allocation1] ss:$2 sm:$0xff] %v178_v0  ;;  %v707_v18 = vpack.i.bf16 %v275_v8, %v274_v7 }
  0x50   : > { %708 = vrot.lane.b32.xlu2 %v707_v18, %s865_s5  ;;  %s810_s5 = scalar_lea.hbm %s1149_s2, 32 }
  0x51   : > { %p812_p10 = scmp.lt.s32.totalorder %s810_s5, %s806_s4 }
  0x53   : > { %p813_p2 = por %p812_p10, %p811_p9 }
  0x55   : > { %v292_v9 = vld.sshfl [vmem:[#allocation1] sm:$0xff pattern:$0x75316420]  ;;  %v293_v10 = vld.sshfl [vmem:[#allocation1 + $0x8] sm:$0xff pattern:$0x75316420]  ;;  %p814_p11 = pnand %p813_p2, %p809_p8 }
  0x56   : > { %309 = vst [vmem:[#allocation1] ss:$2 sm:$0xff] %v178_v0  ;;  %v687_v23 = vpack.i.bf16 %v293_v10, %v292_v9 }
  0x5d   : > { %v310_v12 = vld.sshfl [vmem:[#allocation1] sm:$0xff pattern:$0x75316420]  ;;  %v311_v13 = vld.sshfl [vmem:[#allocation1 + $0x8] sm:$0xff pattern:$0x75316420] }
  0x5e   : > { %329 = vst [vmem:[#allocation1] ss:$2 sm:$0xff] %v178_v0  ;;  %v697_v19 = vpack.i.bf16 %v311_v13, %v310_v12 }
  0x65   : > { %v330_v15 = vld.sshfl [vmem:[#allocation1] sm:$0xff pattern:$0x75316420]  ;;  %v331_v16 = vld.sshfl [vmem:[#allocation1 + $0x8] sm:$0xff pattern:$0x75316420] }
  0x66   : > { %v692_v17 = vpack.i.bf16 %v331_v16, %v330_v15  ;;  %347 = vst [vmem:[#allocation1] ss:$2 sm:$0xff] %v178_v0 }
  0x68   : > { %693 = vrot.lane.b32.xlu1 %v692_v17, %s864_s20 }
  0x6d   : > { %v348_v20 = vld.sshfl [vmem:[#allocation1] sm:$0xff pattern:$0x75316420]  ;;  %v349_v21 = vld.sshfl [vmem:[#allocation1 + $0x8] sm:$0xff pattern:$0x75316420] }
  0x6e   : > { %v682_v22 = vpack.i.bf16 %v349_v21, %v348_v20  ;;  %379 = vst [vmem:[#allocation1] ss:$2 sm:$0xff] %v178_v0 }
  0x70   : > { %683 = vrot.lane.b32.xlu0 %v682_v22, %s866_s6  ;;  %698 = vrot.lane.b32.xlu1 %v697_v19, %s867_s7 }
  0x75   : > { %v380_v17 = vld.sshfl [vmem:[#allocation1] sm:$0xff pattern:$0x75316420]  ;;  %v381_v21 = vld.sshfl [vmem:[#allocation1 + $0x8] sm:$0xff pattern:$0x75316420] }
  0x78   : > { %688 = vrot.lane.b32.xlu0 %v687_v23, %s868_s8  ;;  %718 = vrot.lane.b32.xlu1 %v717_v24, %s869_s14 }
  0x80   : > { %713 = vrot.lane.b32.xlu0 %v712_v11, %s870_s17 }
  0x9a   : > { %v994_v27 = vpop.permute.xlu2 %703 }
  0x9b   : > { %v706_v32 = vunpack.i.h.bf16 %v994_v27  ;;  %v705_v33 = vunpack.i.l.bf16 %v994_v27 }
  0x9d   : > { %v1015_v43 = vsel %vm244_vm1, %v705_v33, %v706_v32  ;;  %v246_v14 = vsel %vm244_vm1, %v706_v32, %v705_v33  ;;  %vm1083_vm1 = vmand %vm206_vm15, %vm1007_vm6 }
  0xaa   : > { %v709_v37 = vpop.permute.xlu2 %708 }
  0xab   : > { %v711_v47 = vunpack.i.h.bf16 %v709_v37  ;;  %v710_v51 = vunpack.i.l.bf16 %v709_v37 }
  0xad   : > { %v283_v0 = vsel %vm282_vm12, %v710_v51, %v711_v47  ;;  %v284_v1 = vsel %vm282_vm12, %v711_v47, %v710_v51 }
  0xae   : > { %v289_v15 = vsel %vm1033_vm13, %v284_v1, 0.0  ;;  %v290_v16 = vsel %vm1037_vm14, %v283_v0, 0.0 }
  0xaf   : > { %v375_v33 = vrot.slane %v289_v15, 4 }
  0xda   : > { %v694_v29 = vpop.permute.xlu1 %693 }
  0xdb   : > { %v696_v35 = vunpack.i.h.bf16 %v694_v29  ;;  %v695_v36 = vunpack.i.l.bf16 %v694_v29 }
  0xdd   : > { %v340_v48 = vsel %vm338_vm0, %v696_v35, %v695_v36  ;;  %v339_v63 = vsel %vm338_vm0, %v695_v36, %v696_v35  ;;  %vm1056_vm0 = vmand %vm211_vm2, %vm1037_vm14  ;;  %v376_v35 = vrot.slane %v290_v16, 4  ;;  %v251_v36 = vsel %vm206_vm15, %v246_v14, 0.0 }
  0xde   : > { %v346_v2 = vsel %vm211_vm2, %v340_v48, 0.0  ;;  %v392_v18 = vrot.slane %v339_v63, 4  ;;  %vm224_vm2 = vcmp.lt.s32.totalorder %v992_v26, 17 }
  0xdf   : > { %v393_v22 = vrot.slane %v346_v2, 4 }
  0xe2   : > { %v684_v38 = vpop.permute.xlu0 %683  ;;  %v699_v39 = vpop.permute.xlu1 %698 }
  0xe3   : > { %v686_v41 = vunpack.i.h.bf16 %v684_v38  ;;  %v685_v42 = vunpack.i.l.bf16 %v684_v38  ;;  %v701_v52 = vunpack.i.h.bf16 %v699_v39  ;;  %v700_v53 = vunpack.i.l.bf16 %v699_v39 }
  0xe5   : > { %v357_v49 = vsel %vm356_vm7, %v685_v42, %v686_v41  ;;  %v358_v50 = vsel %vm356_vm7, %v686_v41, %v685_v42  ;;  %v319_v7 = vsel %vm318_vm8, %v700_v53, %v701_v52  ;;  %v320_v8 = vsel %vm318_vm8, %v701_v52, %v700_v53 }
  0xe6   : > { %v365_v54 = vsel %vm1007_vm6, %v357_v49, 0.0  ;;  %v366_v55 = vsel %vm1020_vm10, %v358_v50, 0.0  ;;  %v327_v24 = vsel %vm1033_vm13, %v319_v7, 0.0  ;;  %v328_v27 = vsel %vm1056_vm0, %v320_v8, 0.0 }
  0xe7   : > { %v405_v56 = vsel %vm396_vm9, %v365_v54, 1.0  ;;  %v406_v58 = vsel %vm396_vm9, %v366_v55, 1.0  ;;  %v403_v38 = vsel %vm396_vm9, %v327_v24, %v392_v18  ;;  %v404_v40 = vsel %vm396_vm9, %v328_v27, %v393_v22 }
  0xe8   : > { %v413_v60 = vpack.c.bf16 %v405_v56, %v405_v56  ;;  %v414_v61 = vpack.c.bf16 %v406_v58, %v406_v58  ;;  %v370_v49 = vrot.slane %v1015_v43, 4  ;;  %v369_v50 = vrot.slane %v251_v36, 4  ;;  %v407_v56 = vld [vmem:[#allocation5] sm:$0xff] }
  0xea   : > { %v689_v3 = vpop.permute.xlu0 %688  ;;  %v424_v4 = vand.u32 %v422_v57, %v413_v60  ;;  %v427_v5 = vand.u32 %v422_v57, %v414_v61  ;;  %v719_v6 = vpop.permute.xlu1 %718  ;;  %v408_v60 = vpack.c.bf16 %v407_v56, %v407_v56 }
  0xeb   : > { %v691_v9 = vunpack.i.h.bf16 %v689_v3  ;;  %v690_v10 = vunpack.i.l.bf16 %v689_v3  ;;  %v721_v11 = vunpack.i.h.bf16 %v719_v6  ;;  %v720_v12 = vunpack.i.l.bf16 %v719_v6 }
  0xec   : > { %434 = vmatpush.bf16.msra.mxu0 %v424_v4  ;;  %447 = vmatpush.bf16.msra.mxu1 %v427_v5 }
  0xed   : > { %v301_v19 = vsel %vm300_vm5, %v690_v10, %v691_v9  ;;  %v302_v20 = vsel %vm300_vm5, %v691_v9, %v690_v10  ;;  %v263_v28 = vsel %vm262_vm4, %v720_v12, %v721_v11  ;;  %v264_v29 = vsel %vm262_vm4, %v721_v11, %v720_v12  ;;  %vm227_vm5 = vmand %vm206_vm15, %vm1033_vm13 }
  0xee   : > { %v307_v23 = vsel %vm1007_vm6, %v301_v19, 0.0  ;;  %v308_v25 = vsel %vm1002_vm3, %v302_v20, 0.0  ;;  %v271_v45 = vsel %vm1083_vm1, %v264_v29, 0.0  ;;  %v272_v46 = vsel %vm1002_vm3, %v263_v28, 0.0 }
  0xef   : > { %v386_v30 = vrot.slane %v307_v23, 4  ;;  %v387_v31 = vrot.slane %v308_v25, 4  ;;  %v399_v34 = vsel %vm396_vm9, %v271_v45, %v375_v33  ;;  %v400_v53 = vsel %vm396_vm9, %v272_v46, %v376_v35 }
  0xf0   : > { %vm415_vm3 = vcmask 302080  }
  0xf1   : > { %v401_v37 = vsel %vm396_vm9, %v380_v17, %v386_v30  ;;  %v402_v39 = vsel %vm396_vm9, %v381_v21, %v387_v31 }
  0xf2   : > { %v714_v41 = vpop.permute.xlu0 %713  ;;  %v411_v42 = vpack.c.bf16 %v403_v38, %v401_v37  ;;  %v412_v44 = vpack.c.bf16 %v404_v40, %v402_v39 }
  0xf3   : > { %v716_v47 = vunpack.i.h.bf16 %v714_v41  ;;  %v715_v48 = vunpack.i.l.bf16 %v714_v41 }
  0xf4   : > { %435 = vmatpush.bf16.msra.mxu0 %v411_v42  ;;  %448 = vmatpush.bf16.msra.mxu1 %v412_v44 }
  0xf5   : > { %v225_v51 = vsel %vm224_vm2, %v715_v48, %v716_v47  ;;  %v226_v52 = vsel %vm224_vm2, %v716_v47, %v715_v48 }
  0xf6   : > { %v233_v54 = vsel %vm227_vm5, %v226_v52, 0.0  ;;  %v234_v55 = vsel %vm1037_vm14, %v225_v51, 0.0 }
  0xf7   : > { %v397_v43 = vsel %vm396_vm9, %v233_v54, %v369_v50  ;;  %v398_v57 = vsel %vm396_vm9, %v234_v55, %v370_v49 }
  0xf8   : > { %v409_v58 = vpack.c.bf16 %v399_v34, %v397_v43  ;;  %v410_v59 = vpack.c.bf16 %v400_v53, %v398_v57 }
  0xfa   : > { %436 = vmatpush.bf16.msra.mxu0 %v409_v58  ;;  %449 = vmatpush.bf16.msra.mxu1 %v410_v59 }
  0xfd   : > { %605 = vmatmul.msk.bf16.vlgmr.msra.gmra.mxu0 %vm415_vm3, %v408_v60  ;;  %606 = vmatmul.msk.bf16.vlgmr.msra.gmra.mxu1 %vm415_vm3, %v408_v60 }
 0x17a   : > { %v438_v26 = vpop.f32.mrf.mxu0  ;;  %v451_v61 = vpop.f32.mrf.mxu1 }
 0x17b   : > { %v607_v63 = vmul.f32 -1.442695, %v438_v26  ;;  %v608_v0 = vmul.f32 -1.442695, %v451_v61 }
 0x17d   : > { %722 = vpow2.f32 %v607_v63 }
 0x17e   : > { %724 = vpow2.f32 %v608_v0 }
 0x182   : > { %v440_v62 = vpop.f32.mrf.mxu0  ;;  %v453_v1 = vpop.f32.mrf.mxu1 }
 0x183   : > { %v723_v2 = vpop.eup %722 }
 0x184   : > { %v725_v3 = vpop.eup %724  ;;  %v461_v4 = vadd.f32 1.0, %v723_v2 }
 0x185   : > { %v462_v5 = vadd.f32 1.0, %v725_v3 }
 0x186   : > { %726 = vrcp.f32 %v461_v4  ;;  %v474_v11 = vand.u32 2147483648, %v461_v4  ;;  %v472_v14 = vand.u32 2147483647, %v461_v4  ;;  %vm468_vm8 = vweird.f32 %v461_v4 }
 0x187   : > { %728 = vrcp.f32 %v462_v5  ;;  %v489_v15 = vand.u32 2147483648, %v462_v5  ;;  %v487_v17 = vand.u32 2147483647, %v462_v5  ;;  %vm483_vm10 = vweird.f32 %v462_v5 }
 0x188   : > { %v475_v19 = vor.u32 1.1754944e-38, %v474_v11  ;;  %vm473_vm11 = vcmp.eq.f32.partialorder %v472_v14, 8.507059e+37 }
 0x189   : > { %v490_v22 = vor.u32 1.1754944e-38, %v489_v15  ;;  %vm488_vm13 = vcmp.eq.f32.partialorder %v487_v17, 8.507059e+37 }
 0x18c   : > { %v727_v6 = vpop.eup %726 }
 0x18d   : > { %v729_v7 = vpop.eup %728  ;;  %v464_v8 = vmul.f32 %v727_v6, %v461_v4  ;;  %vm469_vm6 = vweird.f32 %v727_v6 }
 0x18e   : > { %v479_v9 = vmul.f32 %v729_v7, %v462_v5  ;;  %vm484_vm7 = vweird.f32 %v729_v7  ;;  %vm470_vm9 = vmor %vm468_vm8, %vm469_vm6 }
 0x18f   : > { %v465_v10 = vsub.f32 1.0, %v464_v8  ;;  %vm485_vm12 = vmor %vm483_vm10, %vm484_vm7 }
 0x190   : > { %v480_v12 = vsub.f32 1.0, %v479_v9 }
 0x191   : > { %v466_v13 = vmul.f32 %v727_v6, %v465_v10 }
 0x192   : > { %v481_v16 = vmul.f32 %v729_v7, %v480_v12 }
 0x193   : > { %v467_v18 = vadd.f32 %v727_v6, %v466_v13 }
 0x194   : > { %v482_v20 = vadd.f32 %v729_v7, %v481_v16 }
 0x195   : > { %v471_v21 = vsel %vm470_vm9, %v727_v6, %v467_v18 }
 0x196   : > { %v476_v23 = vsel %vm473_vm11, %v475_v19, %v471_v21  ;;  %v486_v24 = vsel %vm485_vm12, %v729_v7, %v482_v20 }
 0x197   : > { %v493_v25 = vmul.f32 %v476_v23, %v438_v26  ;;  %v491_v27 = vsel %vm488_vm13, %v490_v22, %v486_v24 }
 0x198   : > { %v494_v28 = vmul.f32 %v491_v27, %v451_v61 }
 0x199   : > { %495 = vst [vmem:[%s176_s13] sm:$0xff] %v493_v25 }
 0x19a   : > { %496 = vst [vmem:[%s176_s13 + $0x8] sm:$0xff] %v494_v28 }
 0x19b   : > { %817 = shalt.err (!%p814_p11)
}
 0x19c   : > { %622 = dma.vmem_to_hbm [thread:$0]  (%p953_p3), %s512_s25, 256, %s514_s29, %s498_s30  }
 0x19d PF: > { %s525_s28 = sand.u32 1, %s848_s9   ;;  %p1169_p12 = scmp.ge.s32.totalorder %s860_s12, 2 }
 0x19e   : > { %s526_s8 = scalar_lea.sflag [#allocation4], %s525_s28 }
 0x19f   : > { %p633_p13 = pnand %p1169_p12, %p922_p6 }
 0x1a1   : > { %p634_p0 = pneg %p633_p13 }
 0x1a3   : > { %843 = dma.done.wait (%p634_p0), %s526_s8, 256  }
 0x1a4   : > { %845 = vsyncadd (%p634_p0), %s526_s8, 4294967040  ;;  %p16_p5 = scmp.ge.s32.totalorder %s940_s23, 4   ;;  %s1170_s9 = smov %s852_s10 }
 0x1a5   : > { %s1171_s10 = smov %s856_s11  ;;  %s1172_s11 = smov %s949_s26 }
 0x1a6   : > { %s1173_s12 = smov %s940_s23  ;;  %18 = sbr.rel (!%p16_p5) target bundleno = 6 (0x6), region = 77 }
 0x1ab   :  { %532 = vsyncpa [#allocation3], 1 }
 0x1ac   :  { %534 = vsyncpa [#allocation3 + $0x1], 1 }
 0x1ad   :  { %535 = vsyncpa [#allocation6], 1 }
 0x1ae   :  { %536 = vsyncpa [#allocation4], 1 }
 0x1af   :  { %538 = vsyncpa [#allocation4 + $0x1], 1 }

</bundles_post_ra>
